<compile_context>
chip_gen: v6e
topology: v6e:2x2x1
jax: 0.10.0
libtpu: 0.0.40
codegen_flags: <defaults>
</compile_context>

<pallas_src>
import functools

import jax
import jax.numpy as jnp
from jax.experimental import pallas as pl
from jax.experimental.pallas import tpu as pltpu

HIDDEN = 256


def _round_up(x, m):
    return (x + m - 1) // m * m


def _choose_tb(batch):
    """Batch tile: multiple of 8 sublanes (or the full batch when tiny), at
    least 2 grid steps when batch >= 16 (v7x dual-TC), capped at 1024 rows."""
    if batch < 16:
        return batch                       # single full-dim block (always legal)
    return min(1024, _round_up(pl.cdiv(batch, 2), 8))


def actor_kernel(x_ref, w1_ref, b1_ref, w2_ref, b2_ref, w3_ref, b3_ref,
                 out_ref, *, max_action):
    # x_ref: (TB, S) f32 tile (streams); weights bf16 (VMEM-resident);
    # biases f32 (1, N); out_ref: (TB, A) f32.
    x = x_ref[...].astype(jnp.bfloat16)

    # layer 1: Linear(S -> 256) + ReLU  (bf16 x bf16 -> f32 accumulate on MXU)
    h1 = jnp.dot(x, w1_ref[...], preferred_element_type=jnp.float32)
    h1 = jnp.maximum(h1 + b1_ref[...], 0.0)

    # layer 2: Linear(256 -> 256) + ReLU
    h2 = jnp.dot(h1.astype(jnp.bfloat16), w2_ref[...],
                 preferred_element_type=jnp.float32)
    h2 = jnp.maximum(h2 + b2_ref[...], 0.0)

    # layer 3: Linear(256 -> A), tanh, scale (max_action is a static constant)
    h3 = jnp.dot(h2.astype(jnp.bfloat16), w3_ref[...],
                 preferred_element_type=jnp.float32)
    h3 = h3 + b3_ref[...]
    out_ref[...] = (max_action * jnp.tanh(h3)).astype(out_ref.dtype)


def prepare_actor_params(w1, b1, w2, b2, w3, b3):
    """One-time formatting (call once, NOT per forward): bf16 (in, out) weights
    for the MXU, f32 (1, N) bias rows for lane-broadcast adds."""
    return (w1.astype(jnp.bfloat16), b1.reshape(1, -1).astype(jnp.float32),
            w2.astype(jnp.bfloat16), b2.reshape(1, -1).astype(jnp.float32),
            w3.astype(jnp.bfloat16), b3.reshape(1, -1).astype(jnp.float32))


@functools.partial(jax.jit, static_argnames=("max_action",))
def actor_forward(state, w1, b1, w2, b2, w3, b3, max_action):
    """state: (B, S) f32. Weight/bias args must come from prepare_actor_params."""
    B, S = state.shape
    H = w1.shape[1]
    A = w3.shape[1]

    TB = _choose_tb(B)
    grid = (pl.cdiv(B, TB),)

    kernel = functools.partial(actor_kernel, max_action=float(max_action))

    # Weights/biases: index_map always (0, 0) -> DMA'd once, VMEM-resident
    # across all batch grid steps (~150 KB total, trivially fits every chip).
    resident = lambda shape: pl.BlockSpec(shape, lambda i: (0, 0))

    return pl.pallas_call(
        kernel,
        out_shape=jax.ShapeDtypeStruct((B, A), jnp.float32),
        grid_spec=pltpu.PrefetchScalarGridSpec(
            num_scalar_prefetch=0,
            grid=grid,
            in_specs=[
                pl.BlockSpec((TB, S), lambda i: (i, 0)),    # state tile (streams)
                resident((S, H)),                           # w1
                resident((1, H)),                           # b1
                resident((H, H)),                           # w2
                resident((1, H)),                           # b2
                resident((H, A)),                           # w3
                resident((1, A)),                           # b3
            ],
            out_specs=pl.BlockSpec((TB, A), lambda i: (i, 0)),
        ),
        compiler_params=pltpu.CompilerParams(
            dimension_semantics=("parallel",),              # v7x dual-TC sharding
        ),
    )(state, w1, b1, w2, b2, w3, b3)


def init_actor_params(key, state_dim, action_dim):
    """Deterministic init mirroring nn.Linear default (uniform +-1/sqrt(fan_in)),
    but weights stored as (in, out) so each layer is y = x @ W + b."""
    k1, k2, k3, k4, k5, k6 = jax.random.split(key, 6)

    def linear(kw, kb, fan_in, fan_out):
        bound = 1.0 / jnp.sqrt(fan_in)
        w = jax.random.uniform(kw, (fan_in, fan_out), jnp.float32, -bound, bound)
        b = jax.random.uniform(kb, (fan_out,), jnp.float32, -bound, bound)
        return w, b

    w1, b1 = linear(k1, k2, state_dim, HIDDEN)
    w2, b2 = linear(k3, k4, HIDDEN, HIDDEN)
    w3, b3 = linear(k5, k6, HIDDEN, action_dim)
    return w1, b1, w2, b2, w3, b3


if __name__ == "__main__":
    key = jax.random.PRNGKey(0)
    k_state, k_params = jax.random.split(key)

    batch = 8
    state_dim = 32
    action_dim = 8
    max_action = 2.0

    state = jax.random.normal(k_state, (batch, state_dim), dtype=jnp.float32)
    params = init_actor_params(k_params, state_dim, action_dim)

    # One-time weight formatting (bf16 cast / bias reshape), reused every call.
    kparams = prepare_actor_params(*params)
    kparams = jax.tree_util.tree_map(jax.block_until_ready, kparams)

    out = actor_forward(state, *kparams, max_action=max_action)
    out = jax.block_until_ready(out)

    # Reference check in plain f32 JAX (kernel uses bf16 matmul inputs with f32
    # accumulation, so allow a small absolute tolerance).
    w1, b1, w2, b2, w3, b3 = params
    h = jnp.maximum(state @ w1 + b1, 0.0)
    h = jnp.maximum(h @ w2 + b2, 0.0)
    ref = max_action * jnp.tanh(h @ w3 + b3)

    assert out.shape == (batch, action_dim)
    max_err = float(jnp.max(jnp.abs(out - ref)))
    assert max_err < 5e-2, f"max abs error too large: {max_err}"

    print("KERNEL_OK")
</pallas_src>

<mosaic_0001>
module attributes {stable_mosaic.version = 11 : i64} {
  func.func @actor_kernel(%arg0: i32, %arg1: memref<8x32xf32, #tpu.memory_space<vmem>>, %arg2: memref<32x256xbf16, #tpu.memory_space<vmem>>, %arg3: memref<1x256xf32, #tpu.memory_space<vmem>>, %arg4: memref<256x256xbf16, #tpu.memory_space<vmem>>, %arg5: memref<1x256xf32, #tpu.memory_space<vmem>>, %arg6: memref<256x8xbf16, #tpu.memory_space<vmem>>, %arg7: memref<1x8xf32, #tpu.memory_space<vmem>>, %arg8: memref<8x8xf32, #tpu.memory_space<vmem>>) attributes {dimension_semantics = [#tpu.dimension_semantics<parallel>], iteration_bounds = array<i64: 1>, scalar_prefetch = 0 : i64, scratch_operands = 0 : i64, tpu.core_type = #tpu.core_type<tc>, window_params = [{transform_indices = @transform_0, window_bounds = array<i64: 8, 32>}, {pipeline_mode = #tpu.pipeline_mode<synchronous>, transform_indices = @transform_1, window_bounds = array<i64: 32, 256>}, {pipeline_mode = #tpu.pipeline_mode<synchronous>, transform_indices = @transform_2, window_bounds = array<i64: 1, 256>}, {pipeline_mode = #tpu.pipeline_mode<synchronous>, transform_indices = @transform_3, window_bounds = array<i64: 256, 256>}, {pipeline_mode = #tpu.pipeline_mode<synchronous>, transform_indices = @transform_4, window_bounds = array<i64: 1, 256>}, {pipeline_mode = #tpu.pipeline_mode<synchronous>, transform_indices = @transform_5, window_bounds = array<i64: 256, 8>}, {pipeline_mode = #tpu.pipeline_mode<synchronous>, transform_indices = @transform_6, window_bounds = array<i64: 1, 8>}, {transform_indices = @transform_7, window_bounds = array<i64: 8, 8>}]} {
    %c0 = arith.constant 0 : index
    %c0_0 = arith.constant 0 : index
    %0 = vector.load %arg1[%c0, %c0_0] : memref<8x32xf32, #tpu.memory_space<vmem>>, vector<8x32xf32>
    %1 = arith.truncf %0 : vector<8x32xf32> to vector<8x32xbf16>
    %c0_1 = arith.constant 0 : index
    %c0_2 = arith.constant 0 : index
    %2 = vector.load %arg2[%c0_1, %c0_2] : memref<32x256xbf16, #tpu.memory_space<vmem>>, vector<32x256xbf16>
    %cst = arith.constant dense<0.000000e+00> : vector<8x256xf32>
    %3 = tpu.matmul %1, %2, %cst {dimension_numbers = #tpu.dot_dimension_numbers<[1], [0], [0], [1], [0, 0, 1, 1], [], []>} : vector<8x32xbf16>, vector<32x256xbf16>, vector<8x256xf32> -> vector<8x256xf32>
    %c0_3 = arith.constant 0 : index
    %c0_4 = arith.constant 0 : index
    %4 = vector.load %arg3[%c0_3, %c0_4] : memref<1x256xf32, #tpu.memory_space<vmem>>, vector<1x256xf32>
    %5 = vector.broadcast %4 : vector<1x256xf32> to vector<8x256xf32>
    %6 = arith.addf %3, %5 : vector<8x256xf32>
    %cst_5 = arith.constant 0.000000e+00 : f32
    %7 = vector.broadcast %cst_5 : f32 to vector<8x256xf32>
    %8 = arith.maximumf %6, %7 : vector<8x256xf32>
    %9 = arith.truncf %8 : vector<8x256xf32> to vector<8x256xbf16>
    %c0_6 = arith.constant 0 : index
    %c0_7 = arith.constant 0 : index
    %10 = vector.load %arg4[%c0_6, %c0_7] : memref<256x256xbf16, #tpu.memory_space<vmem>>, vector<256x256xbf16>
    %cst_8 = arith.constant dense<0.000000e+00> : vector<8x256xf32>
    %11 = tpu.matmul %9, %10, %cst_8 {dimension_numbers = #tpu.dot_dimension_numbers<[1], [0], [0], [1], [0, 0, 1, 1], [], []>} : vector<8x256xbf16>, vector<256x256xbf16>, vector<8x256xf32> -> vector<8x256xf32>
    %c0_9 = arith.constant 0 : index
    %c0_10 = arith.constant 0 : index
    %12 = vector.load %arg5[%c0_9, %c0_10] : memref<1x256xf32, #tpu.memory_space<vmem>>, vector<1x256xf32>
    %13 = vector.broadcast %12 : vector<1x256xf32> to vector<8x256xf32>
    %14 = arith.addf %11, %13 : vector<8x256xf32>
    %cst_11 = arith.constant 0.000000e+00 : f32
    %15 = vector.broadcast %cst_11 : f32 to vector<8x256xf32>
    %16 = arith.maximumf %14, %15 : vector<8x256xf32>
    %17 = arith.truncf %16 : vector<8x256xf32> to vector<8x256xbf16>
    %c0_12 = arith.constant 0 : index
    %c0_13 = arith.constant 0 : index
    %18 = vector.load %arg6[%c0_12, %c0_13] : memref<256x8xbf16, #tpu.memory_space<vmem>>, vector<256x8xbf16>
    %cst_14 = arith.constant dense<0.000000e+00> : vector<8x8xf32>
    %19 = tpu.matmul %17, %18, %cst_14 {dimension_numbers = #tpu.dot_dimension_numbers<[1], [0], [0], [1], [0, 0, 1, 1], [], []>} : vector<8x256xbf16>, vector<256x8xbf16>, vector<8x8xf32> -> vector<8x8xf32>
    %c0_15 = arith.constant 0 : index
    %c0_16 = arith.constant 0 : index
    %20 = vector.load %arg7[%c0_15, %c0_16] : memref<1x8xf32, #tpu.memory_space<vmem>>, vector<1x8xf32>
    %21 = vector.broadcast %20 : vector<1x8xf32> to vector<8x8xf32>
    %22 = arith.addf %19, %21 : vector<8x8xf32>
    %23 = math.tanh %22 : vector<8x8xf32>
    %cst_17 = arith.constant 2.000000e+00 : f32
    %24 = vector.broadcast %cst_17 : f32 to vector<8x8xf32>
    %25 = arith.mulf %24, %23 : vector<8x8xf32>
    %c0_18 = arith.constant 0 : index
    %c0_19 = arith.constant 0 : index
    %26 = vector.load %arg8[%c0_18, %c0_19] : memref<8x8xf32, #tpu.memory_space<vmem>>, vector<8x8xf32>
    tpu.vector_store %arg8[%c0_18, %c0_19], %25 {strides = array<i32>} : memref<8x8xf32, #tpu.memory_space<vmem>>, vector<8x8xf32>,
    return
  }
  func.func @transform_0(%arg0: i32) -> (i32, i32) {
    %c0_i32 = arith.constant 0 : i32
    %c0_i32_0 = arith.constant 0 : i32
    return %arg0, %c0_i32 : i32, i32
  }
  func.func @transform_1(%arg0: i32) -> (i32, i32) {
    %c0_i32 = arith.constant 0 : i32
    %c0_i32_0 = arith.constant 0 : i32
    %c0_i32_1 = arith.constant 0 : i32
    return %c0_i32, %c0_i32_0 : i32, i32
  }
  func.func @transform_2(%arg0: i32) -> (i32, i32) {
    %c0_i32 = arith.constant 0 : i32
    %c0_i32_0 = arith.constant 0 : i32
    %c0_i32_1 = arith.constant 0 : i32
    return %c0_i32, %c0_i32_0 : i32, i32
  }
  func.func @transform_3(%arg0: i32) -> (i32, i32) {
    %c0_i32 = arith.constant 0 : i32
    %c0_i32_0 = arith.constant 0 : i32
    %c0_i32_1 = arith.constant 0 : i32
    return %c0_i32, %c0_i32_0 : i32, i32
  }
  func.func @transform_4(%arg0: i32) -> (i32, i32) {
    %c0_i32 = arith.constant 0 : i32
    %c0_i32_0 = arith.constant 0 : i32
    %c0_i32_1 = arith.constant 0 : i32
    return %c0_i32, %c0_i32_0 : i32, i32
  }
  func.func @transform_5(%arg0: i32) -> (i32, i32) {
    %c0_i32 = arith.constant 0 : i32
    %c0_i32_0 = arith.constant 0 : i32
    %c0_i32_1 = arith.constant 0 : i32
    return %c0_i32, %c0_i32_0 : i32, i32
  }
  func.func @transform_6(%arg0: i32) -> (i32, i32) {
    %c0_i32 = arith.constant 0 : i32
    %c0_i32_0 = arith.constant 0 : i32
    %c0_i32_1 = arith.constant 0 : i32
    return %c0_i32, %c0_i32_0 : i32, i32
  }
  func.func @transform_7(%arg0: i32) -> (i32, i32) {
    %c0_i32 = arith.constant 0 : i32
    %c0_i32_0 = arith.constant 0 : i32
    return %arg0, %c0_i32 : i32, i32
  }
}

</mosaic_0001>

<bundles_post_ra>
// kernel: actor_forward.1
= control target key start
LH: loop header
LB: loop body
LE: loop exit
PB: predicated region body
PF: predicated region fallthrough
CT: control target
= control target key end

     0   :  { %12 = vsyncpa [#allocation3], 0  ;;  %s892_s0 = inlined_call_operand.vmem [shape: f32[8,32], index: 0, kind: input, shape index: {}]   ;;  %s893_s1 = inlined_call_operand.vmem [shape: bf16[32,256], index: 1, kind: input, shape index: {}]   ;;  %s894_s2 = inlined_call_operand.vmem [shape: f32[1,256], index: 2, kind: input, shape index: {}]   ;;  %s895_s3 = inlined_call_operand.hbm [shape: bf16[256,256], index: 3, kind: input, shape index: {}]   ;;  %s896_s4 = inlined_call_operand.vmem [shape: f32[1,256], index: 4, kind: input, shape index: {}]   ;;  %s897_s5 = inlined_call_operand.vmem [shape: bf16[256,8], index: 5, kind: input, shape index: {}]   ;;  %s898_s6 = inlined_call_operand.vmem [shape: f32[1,8], index: 6, kind: input, shape index: {}]   ;;  %s899_s7 = inlined_call_operand.hbm [shape: f32[8,8], index: 7, kind: output, shape index: {}]  }
   0x1   :  { %13 = vsyncpa [#allocation4], 0  ;;  %s769_s24 = smov [#allocation2]  }
   0x2   :  { %s25_s25 = sshll.u32 %s769_s24, 4  ;;  %s26_s25 = int_to_ptr.vmem [resolvable:$true] %s25_s25 }
   0x3   :  { %s733_s26 = scalar_lea.vmem %s26_s25, 4096  ;;  %p738_p1 = scmp.lt.s32.totalorder %s26_s25, %s26_s25 }
   0x4   :  { %p734_p0 = scmp.ne.s32.totalorder %s26_s25, %s733_s26  ;;  %p739_p2 = scmp.lt.s32.totalorder %s733_s26, %s733_s26 }
   0x6   :  { %p740_p3 = por %p739_p2, %p738_p1 }
   0x8   :  { %p741_p4 = pnand %p740_p3, %p734_p0 }
   0xa   :  { %744 = shalt.err (!%p741_p4)
}
   0xb   :  { %s770_s27 = smov 128   ;;  %s771_s28 = smov 8  }
   0xc   :  { %31 = dma.hbm_to_vmem [thread:$0]  %s895_s3, 4096, %s26_s25, [#allocation3], %s770_s27, %s770_s27, %s771_s28  }
   0xd   :  { %765 = dma.done.wait [#allocation3], 4096  }
   0xe   :  { %766 = vsyncadd [#allocation3], 4294963200  ;;  %v772_v0 = vmov 0   ;;  %v653_v1 = vld [vmem:[%s893_s1 + $0x14] ss:$8 sps:$4 sm:$0xff]   ;;  %v42_v5 = vld [vmem:[%s892_s0] sm:$0xff]  ;;  %v50_v51 = vlaneseq }
   0xf   :  { %116 = vmatprep.mubr.bf16.mxu0 %v772_v0  ;;  %v655_v2 = vld [vmem:[%s893_s1 + $0x10] ss:$8 sps:$4 sm:$0xff]   ;;  %96 = vmatprep.subr.bf16.mxu0 %v653_v1  ;;  %v656_v3 = vld [vmem:[%s893_s1 + $0x4] ss:$8 sps:$4 sm:$0xff]   ;;  %v658_v4 = vld [vmem:[%s893_s1] ss:$8 sps:$4 sm:$0xff]   ;;  %v43_v9 = vpack.c.bf16 %v42_v5, %v42_v5 }
  0x10   :  { %97 = vmatpush1.bf16.msra.mxu0 %v655_v2  ;;  %v659_v6 = vld [vmem:[#allocation2 + $0x74] ss:$8 sps:$4 sm:$0xff]   ;;  %v661_v7 = vld [vmem:[#allocation2 + $0x70] ss:$8 sps:$4 sm:$0xff]   ;;  %v662_v8 = vld [vmem:[#allocation2 + $0x64] ss:$8 sps:$4 sm:$0xff]  }
  0x11   :  { %98 = vmatprep.subr.bf16.mxu0 %v656_v3  ;;  %333 = vmatprep.subr.bf16.mxu1 %v659_v6  ;;  %v664_v10 = vld [vmem:[#allocation2 + $0x60] ss:$8 sps:$4 sm:$0xff]   ;;  %vm80_vm0 = vcmask 261120   ;;  %v665_v11 = vld [vmem:[#allocation2 + $0x54] ss:$8 sps:$4 sm:$0xff]   ;;  %v51_v52 = vshrl.u32 %v50_v51, 7 }
  0x12   :  { %334 = vmatpush1.bf16.msra.mxu1 %v661_v7  ;;  %v667_v12 = vld [vmem:[#allocation2 + $0x50] ss:$8 sps:$4 sm:$0xff]   ;;  %v668_v13 = vld [vmem:[#allocation2 + $0x44] ss:$8 sps:$4 sm:$0xff]   ;;  %v670_v14 = vld [vmem:[#allocation2 + $0x40] ss:$8 sps:$4 sm:$0xff]  }
  0x13   :  { %335 = vmatprep.subr.bf16.mxu1 %v662_v8  ;;  %v671_v15 = vld [vmem:[#allocation2 + $0x34] ss:$8 sps:$4 sm:$0xff]   ;;  %v673_v16 = vld [vmem:[#allocation2 + $0x30] ss:$8 sps:$4 sm:$0xff]   ;;  %v674_v17 = vld [vmem:[#allocation2 + $0x24] ss:$8 sps:$4 sm:$0xff]  }
  0x14   :  { %99 = vmatpush1.bf16.msra.mxu0 %v658_v4  ;;  %v676_v18 = vld [vmem:[#allocation2 + $0x20] ss:$8 sps:$4 sm:$0xff]   ;;  %v677_v19 = vld [vmem:[#allocation2 + $0x14] ss:$8 sps:$4 sm:$0xff]   ;;  %v679_v20 = vld [vmem:[#allocation2 + $0x10] ss:$8 sps:$4 sm:$0xff]  }
  0x15   :  { %v680_v21 = vld [vmem:[#allocation2 + $0x4] ss:$8 sps:$4 sm:$0xff]   ;;  %v682_v22 = vld [vmem:[#allocation2] ss:$8 sps:$4 sm:$0xff]   ;;  %v683_v23 = vld [vmem:[#allocation2 + $0xf4] ss:$8 sps:$4 sm:$0xff]  }
  0x16   :  { %336 = vmatpush1.bf16.msra.mxu1 %v664_v10  ;;  %v685_v24 = vld [vmem:[#allocation2 + $0xf0] ss:$8 sps:$4 sm:$0xff]   ;;  %v686_v25 = vld [vmem:[#allocation2 + $0xe4] ss:$8 sps:$4 sm:$0xff]   ;;  %v688_v26 = vld [vmem:[#allocation2 + $0xe0] ss:$8 sps:$4 sm:$0xff]  }
  0x17   :  { %576 = vmatmul.mubr.msk.bf16.vlgmr.msra.gmra.mxu0 %vm80_vm0, %v43_v9  ;;  %337 = vmatprep.subr.bf16.mxu1 %v665_v11  ;;  %v689_v27 = vld [vmem:[#allocation2 + $0xd4] ss:$8 sps:$4 sm:$0xff]   ;;  %v691_v28 = vld [vmem:[#allocation2 + $0xd0] ss:$8 sps:$4 sm:$0xff]   ;;  %v692_v29 = vld [vmem:[#allocation2 + $0xc4] ss:$8 sps:$4 sm:$0xff]  }
  0x18   :  { %v694_v30 = vld [vmem:[#allocation2 + $0xc0] ss:$8 sps:$4 sm:$0xff]   ;;  %v695_v31 = vld [vmem:[#allocation2 + $0xb4] ss:$8 sps:$4 sm:$0xff]   ;;  %v697_v32 = vld [vmem:[#allocation2 + $0xb0] ss:$8 sps:$4 sm:$0xff]  }
  0x19   :  { %v698_v33 = vld [vmem:[#allocation2 + $0xa4] ss:$8 sps:$4 sm:$0xff]   ;;  %v700_v34 = vld [vmem:[#allocation2 + $0xa0] ss:$8 sps:$4 sm:$0xff]   ;;  %v701_v35 = vld [vmem:[#allocation2 + $0x94] ss:$8 sps:$4 sm:$0xff]  }
  0x1a   :  { %338 = vmatpush1.bf16.msra.mxu1 %v667_v12  ;;  %v703_v36 = vld [vmem:[#allocation2 + $0x90] ss:$8 sps:$4 sm:$0xff]   ;;  %v704_v37 = vld [vmem:[#allocation2 + $0x84] ss:$8 sps:$4 sm:$0xff]   ;;  %v706_v38 = vld [vmem:[#allocation2 + $0x80] ss:$8 sps:$4 sm:$0xff]  }
  0x1b   :  { %339 = vmatprep.subr.bf16.mxu1 %v668_v13  ;;  %v707_v39 = vld [vmem:[%s897_s5 + $0x78] sm:$0xff]   ;;  %v709_v41 = vld [vmem:[%s897_s5 + $0x70] sm:$0xff]   ;;  %v711_v43 = vld [vmem:[%s897_s5 + $0x68] sm:$0xff]   ;;  %v52_v53 = vsub.s32 0, %v51_v52  ;;  %v56_v55 = vsub.s32 1, %v51_v52  ;;  %vm555_vm1 = vcmask 64512  }
  0x1c   :  { %v708_v40 = vld [vmem:[%s897_s5 + $0x38] sm:$0xff]   ;;  %626 = vmatprep.subr.bf16.mxu0 %v707_v39  ;;  %v710_v42 = vld [vmem:[%s897_s5 + $0x30] sm:$0xff]   ;;  %v712_v44 = vld [vmem:[%s897_s5 + $0x28] sm:$0xff]  }
  0x1d   :  { %627 = vmatpush3.bf16.msra.mxu0 %v708_v40  ;;  %v713_v45 = vld [vmem:[%s897_s5 + $0x60] sm:$0xff]   ;;  %v715_v47 = vld [vmem:[%s897_s5 + $0x58] sm:$0xff]   ;;  %v717_v49 = vld [vmem:[%s897_s5 + $0x50] sm:$0xff]  }
  0x1e   :  { %340 = vmatpush1.bf16.msra.mxu1 %v670_v14  ;;  %628 = vmatprep.subr.bf16.mxu0 %v709_v41  ;;  %v714_v46 = vld [vmem:[%s897_s5 + $0x20] sm:$0xff]   ;;  %v716_v48 = vld [vmem:[%s897_s5 + $0x18] sm:$0xff]   ;;  %v718_v50 = vld [vmem:[%s897_s5 + $0x10] sm:$0xff]  }
  0x1f   :  { %341 = vmatprep.subr.bf16.mxu1 %v671_v15  ;;  %v48_v54 = vld [vmem:[%s894_s2] sm:$0x3]  ;;  %v719_v4 = vld [vmem:[%s897_s5 + $0x48] sm:$0xff]  }
  0x20   :  { %v53_v56 = vrot.slane %v48_v54, %v52_v53  ;;  %v57_v57 = vrot.slane %v48_v54, %v56_v55  ;;  %v720_v5 = vld [vmem:[%s897_s5 + $0x8] sm:$0xff]   ;;  %v721_v6 = vld [vmem:[%s897_s5 + $0x40] sm:$0xff]  }
  0x21   :  { %629 = vmatpush3.bf16.msra.mxu0 %v710_v42  ;;  %v722_v7 = vld [vmem:[%s897_s5] sm:$0xff]  }
  0x22   :  { %342 = vmatpush1.bf16.msra.mxu1 %v673_v16  ;;  %630 = vmatprep.subr.bf16.mxu0 %v711_v43  ;;  %v161_v8 = vld [vmem:[%s896_s4] sm:$0x3]  ;;  %s773_s4 = smov [#allocation5]  }
  0x23   :  { %343 = vmatprep.subr.bf16.mxu1 %v674_v17  ;;  %v166_v9 = vrot.slane %v161_v8, %v52_v53  ;;  %v170_v10 = vrot.slane %v161_v8, %v56_v55  ;;  %s563_s25 = sshll.u32 %s773_s4, 4  ;;  %s564_s25 = int_to_ptr.vmem [resolvable:$true] %s563_s25 }
  0x24   :  { %s745_s26 = scalar_lea.vmem %s564_s25, 128  ;;  %p750_p6 = scmp.lt.s32.totalorder %s564_s25, %s564_s25 }
  0x25   :  { %631 = vmatpush3.bf16.msra.mxu0 %v712_v44  ;;  %p746_p5 = scmp.ne.s32.totalorder %s564_s25, %s745_s26  ;;  %p751_p7 = scmp.lt.s32.totalorder %s745_s26, %s745_s26 }
  0x26   :  { %344 = vmatpush1.bf16.msra.mxu1 %v676_v18  ;;  %632 = vmatprep.subr.bf16.mxu0 %v713_v45 }
  0x27   :  { %345 = vmatprep.subr.bf16.mxu1 %v677_v19  ;;  %p752_p8 = por %p751_p7, %p750_p6 }
  0x29   :  { %633 = vmatpush3.bf16.msra.mxu0 %v714_v46  ;;  %p753_p9 = pnand %p752_p8, %p746_p5 }
  0x2a   :  { %346 = vmatpush1.bf16.msra.mxu1 %v679_v20  ;;  %634 = vmatprep.subr.bf16.mxu0 %v715_v47 }
  0x2b   :  { %347 = vmatprep.subr.bf16.mxu1 %v680_v21 }
  0x2d   :  { %635 = vmatpush3.bf16.msra.mxu0 %v716_v48 }
  0x2e   :  { %348 = vmatpush1.bf16.msra.mxu1 %v682_v22  ;;  %636 = vmatprep.subr.bf16.mxu0 %v717_v49  ;;  %v609_v22 = vld [vmem:[%s898_s6] ss:$0 sm:$0xff] }
  0x2f   :  { %349 = vmatprep.subr.bf16.mxu1 %v683_v23 }
  0x31   :  { %637 = vmatpush3.bf16.msra.mxu0 %v718_v50 }
  0x32   :  { %350 = vmatpush2.bf16.msra.mxu1 %v685_v24  ;;  %638 = vmatprep.subr.bf16.mxu0 %v719_v4 }
  0x33   :  { %351 = vmatprep.subr.bf16.mxu1 %v686_v25 }
  0x35   :  { %639 = vmatpush3.bf16.msra.mxu0 %v720_v5 }
  0x36   :  { %352 = vmatpush2.bf16.msra.mxu1 %v688_v26  ;;  %640 = vmatprep.subr.bf16.mxu0 %v721_v6 }
  0x37   :  { %353 = vmatprep.subr.bf16.mxu1 %v689_v27 }
  0x39   :  { %641 = vmatpush3.bf16.msra.mxu0 %v722_v7 }
  0x3a   :  { %354 = vmatpush2.bf16.msra.mxu1 %v691_v28 }
  0x3b   :  { %355 = vmatprep.subr.bf16.mxu1 %v692_v29 }
  0x3e   :  { %356 = vmatpush2.bf16.msra.mxu1 %v694_v30 }
  0x3f   :  { %357 = vmatprep.subr.bf16.mxu1 %v695_v31 }
  0x42   :  { %358 = vmatpush2.bf16.msra.mxu1 %v697_v32 }
  0x43   :  { %359 = vmatprep.subr.bf16.mxu1 %v698_v33 }
  0x46   :  { %360 = vmatpush2.bf16.msra.mxu1 %v700_v34 }
  0x47   :  { %361 = vmatprep.subr.bf16.mxu1 %v701_v35 }
  0x4a   :  { %362 = vmatpush2.bf16.msra.mxu1 %v703_v36 }
  0x4b   :  { %363 = vmatprep.subr.bf16.mxu1 %v704_v37 }
  0x4e   :  { %364 = vmatpush2.bf16.msra.mxu1 %v706_v38 }
  0xd7   :  { %v118_v58 = vpop.f32.mrf.mxu0 }
  0xd8   :  { %v119_v59 = vadd.f32 %v118_v58, %v53_v56 }
  0xd9   :  { %v120_v60 = vpop.f32.mrf.mxu0 }
  0xda   :  { %v121_v61 = vadd.f32 %v120_v60, %v57_v57  ;;  %v125_v62 = vmax.f32 %v119_v59, 0.0 }
  0xdb   :  { %v122_v63 = vpop.f32.mrf.mxu0 }
  0xdc   :  { %v126_v0 = vmax.f32 %v121_v61, 0.0  ;;  %v127_v3 = vpack.c.bf16 %v125_v62, %v125_v62 }
  0xdd   :  { %v123_v1 = vpop.f32.mrf.mxu0 }
  0xde   :  { %v128_v2 = vpack.c.bf16 %v126_v0, %v126_v0 }
  0xe0   :  { %365 = vmatprep.mubr.bf16.mxu1 %v128_v2 }
  0xe1   :  { %366 = vmatmul.mubr.bf16.vlgmr.msra.gmra.mxu1 %v127_v3 }
 0x1a1   :  { %v367_v11 = vpop.f32.mrf.mxu1 }
 0x1a2   :  { %v368_v12 = vadd.f32 %v367_v11, %v166_v9 }
 0x1a3   :  { %v369_v13 = vpop.f32.mrf.mxu1 }
 0x1a4   :  { %v370_v14 = vadd.f32 %v369_v13, %v170_v10  ;;  %v374_v15 = vmax.f32 %v368_v12, 0.0 }
 0x1a5   :  { %v371_v16 = vpop.f32.mrf.mxu1 }
 0x1a6   :  { %v375_v17 = vmax.f32 %v370_v14, 0.0  ;;  %v376_v20 = vpack.c.bf16 %v374_v15, %v374_v15 }
 0x1a7   :  { %v372_v18 = vpop.f32.mrf.mxu1 }
 0x1a8   :  { %v377_v19 = vpack.c.bf16 %v375_v17, %v375_v17 }
 0x1aa   :  { %545 = vmatprep.mubr.bf16.mxu0 %v377_v19 }
 0x1ab   :  { %546 = vmatmul.mubr.bf16.vlgmr.msra.gmra.mxu0 %v376_v20 }
 0x26b   :  { %v642_v21 = vpop.f32.mrf.mxu0 }
 0x26d   :  { %v643_v23 = vpop.f32.mrf.mxu0 }
 0x26e   :  { %v644_v24 = vadd.f32 %v643_v23, %v642_v21 }
 0x26f   :  { %v645_v25 = vpop.f32.mrf.mxu0 }
 0x270   :  { %v548_v26 = vadd.f32 %v644_v24, %v609_v22 }
 0x271   :  { %v646_v27 = vpop.f32.mrf.mxu0 }
 0x272   :  { %723 = vtanh.f32 %v548_v26 }
 0x27f   :  { %v724_v28 = vpop.eup %723 }
 0x280   :  { %v554_v29 = vmul.f32 2.0, %v724_v28 }
 0x282   :  { %556 = vst.msk [vmem:[#allocation5] sm:$0xff] %vm555_vm1, %v554_v29 }
 0x283   :  { %756 = shalt.err (!%p753_p9)
}
 0x284   :  { %566 = dma.vmem_to_hbm [thread:$0]  %s564_s25, 128, %s899_s7, [#allocation4]  }
 0x285   :  { %767 = dma.done.wait [#allocation4], 128  }
 0x286   :  { %768 = vsyncadd [#allocation4], 4294967168 }
 0x287   :  { %570 = vsyncpa [#allocation3], 1 }
 0x288   :  { %571 = vsyncpa [#allocation4], 1 }

</bundles_post_ra>
